<compile_context>
chip_gen: v6e
topology: v6e:2x2x1
jax: 0.10.0
libtpu: 0.0.40
codegen_flags: <defaults>
</compile_context>

<pallas_src>
import functools

import jax
import jax.numpy as jnp
from jax.experimental import pallas as pl
from jax.experimental.pallas import tpu as pltpu


def _round_up(x, m):
    return (x + m - 1) // m * m


def _router_kernel(x_ref, w_ref, logits_ref, topk_ref, aux_ref, *,
                   k, num_experts, total_tokens):
    tm = x_ref.shape[0]
    e_pad = w_ref.shape[-1]
    out_w = topk_ref.shape[-1]

    # --- gating matmul (MXU), native (bf16) inputs, f32 accumulation ---
    logits = jnp.dot(x_ref[...], w_ref[...], preferred_element_type=jnp.float32)
    logits_ref[...] = logits  # lane-dense (tm, e_pad) store; wrapper slices [:, :E]

    # Mask the zero-padded expert columns out of softmax / top-k.
    col_idx = jax.lax.broadcasted_iota(jnp.int32, (tm, e_pad), 1)
    real_col = col_idx < num_experts
    glogits = jnp.where(real_col, logits, -jnp.inf)

    # --- softmax over experts (VPU + EUP) ---
    m = jnp.max(glogits, axis=-1, keepdims=True)
    ex = jnp.exp(glogits - m)
    denom = jnp.sum(ex, axis=-1, keepdims=True)
    probs = ex * pl.reciprocal(denom, approx=True)

    # Validity mask for the (possibly zero-padded) last token tile.
    row0 = pl.program_id(0) * tm
    rows = row0 + jax.lax.broadcasted_iota(jnp.int32, (tm, 1), 0)
    valid = (rows < total_tokens).astype(jnp.float32)            # (tm, 1)

    # --- iterative top-k (k small & static); lowest index wins ties ---
    masked = jnp.where(real_col, probs, -jnp.inf)
    cnt = jnp.zeros((1, e_pad), jnp.float32)   # per-expert selection counts (valid rows only)
    top_vals = []
    top_idx_f = []
    for j in range(k):
        v = jnp.max(masked, axis=-1, keepdims=True)
        is_max = masked == v
        idx = jnp.min(jnp.where(is_max, col_idx, e_pad), axis=-1, keepdims=True)
        sel = col_idx == idx
        cnt = cnt + jnp.sum(jnp.where(sel, valid, 0.0), axis=0, keepdims=True)
        top_vals.append(v)
        top_idx_f.append(idx.astype(jnp.float32))
        if j + 1 < k:
            masked = jnp.where(sel, -jnp.inf, masked)

    top_sum = top_vals[0]
    for j in range(1, k):
        top_sum = top_sum + top_vals[j]

    # Pack weights (lanes [0,k)) and indices-as-f32 (lanes [k,2k)) into one
    # lane-dense 128-wide block; single unmasked store per tile.
    lane = jax.lax.broadcasted_iota(jnp.int32, (tm, out_w), 1)
    packed = jnp.zeros((tm, out_w), jnp.float32)
    for j in range(k):
        wj = top_vals[j] / top_sum          # exact renorm (approx recip cancels out)
        packed = jnp.where(lane == j, wj, packed)
        packed = jnp.where(lane == (k + j), top_idx_f[j], packed)
    topk_ref[...] = packed

    # --- merged aux partials: probs [0,e_pad), counts [e_pad,2e_pad), z at 2e_pad ---
    prob_sum = jnp.sum(probs * valid, axis=0, keepdims=True)      # (1, e_pad)
    z = m + jnp.log(denom)                                        # logsumexp(logits), (tm, 1)
    z_sum = jnp.sum(z * z * valid, axis=0, keepdims=True)         # (1, 1)

    aux_ref[...] = jnp.zeros_like(aux_ref)
    aux_ref[:, 0:e_pad] = jnp.broadcast_to(prob_sum, (8, e_pad))
    aux_ref[:, e_pad:2 * e_pad] = jnp.broadcast_to(cnt, (8, e_pad))
    aux_ref[:, 2 * e_pad:2 * e_pad + 1] = jnp.broadcast_to(z_sum, (8, 1))


def _vmem_limit_bytes(tm, h, e_pad, out_w, aux_w, x_dtype, w_dtype):
    xb = jnp.dtype(x_dtype).itemsize
    wb = jnp.dtype(w_dtype).itemsize
    est = 2 * tm * h * xb                 # double-buffered x tile
    est += 2 * h * e_pad * wb             # weight block (conservatively double-buffered)
    est += 2 * tm * e_pad * 4             # logits output tile
    est += 2 * tm * out_w * 4             # packed top-k output tile
    est += 2 * 8 * aux_w * 4              # merged aux partial tile
    est += 6 * tm * e_pad * 4             # in-kernel (tm, e_pad) f32 temporaries / spill room
    est = est * 3 // 2                    # headroom for Mosaic internal scratch
    try:
        cap = int(pltpu.get_tpu_info().vmem_capacity_bytes)
    except Exception:
        cap = 64 * 2**20                  # conservative (v7x-sized) fallback
    # ~75% of physical VMEM: ~48 MiB on v7x (64 MiB), ~96 MiB on v5e/v6e (128 MiB).
    return int(max(16 * 2**20, min(3 * cap // 4, est)))


def expert_router(hidden_states, router_weight, *, num_selected_experts,
                  tm=512, cast_to_bf16=True):
    """Pallas top-k softmax gating router.

    Args:
      hidden_states: [B, S, H] (f32 or bf16; f32 is cast to bf16 for the MXU).
      router_weight: [H, E].
    Returns:
      expert_weights [T, k] f32, expert_indices [T, k] i32,
      router_logits [T, E] f32, aux_loss_dict.
    """
    b, s, h = hidden_states.shape
    h2, e = router_weight.shape
    assert h == h2
    k = num_selected_experts
    assert 0 < k <= e
    t = b * s

    # bf16 through the MXU (f32 accumulation): halves HBM bytes on the
    # bandwidth-bound activation read (biggest relative win on v5e).
    if cast_to_bf16 and hidden_states.dtype == jnp.float32:
        hidden_states = hidden_states.astype(jnp.bfloat16)
    router_weight = router_weight.astype(hidden_states.dtype)

    # Lane-dense output widths.
    e_pad = _round_up(e, 128)
    out_w = _round_up(2 * k, 128)
    aux_w = _round_up(2 * e_pad + 1, 128)

    # Token tile: multiple of 16 (bf16 sublane packing); clamped so the grid has
    # >= 4 steps (2 pipelined steps per TensorCore on v7x megacore) and never
    # exceeds the padded token count.
    tm = _round_up(max(16, tm), 16)
    tm = min(tm, _round_up(pl.cdiv(t, 4), 16), _round_up(t, 16))
    tm = max(16, tm)
    grid = pl.cdiv(t, tm)
    t_pad = grid * tm

    x = hidden_states.reshape(t, h)
    if t_pad != t:
        x = jnp.pad(x, ((0, t_pad - t), (0, 0)))
    w = router_weight
    if e_pad != e:
        w = jnp.pad(w, ((0, 0), (0, e_pad - e)))

    kernel = functools.partial(_router_kernel, k=k, num_experts=e, total_tokens=t)

    logits, packed, aux = pl.pallas_call(
        kernel,
        out_shape=(
            jax.ShapeDtypeStruct((t_pad, e_pad), jnp.float32),   # router_logits (padded)
            jax.ShapeDtypeStruct((t_pad, out_w), jnp.float32),   # packed weights+indices
            jax.ShapeDtypeStruct((grid * 8, aux_w), jnp.float32),  # merged aux partials
        ),
        grid_spec=pltpu.PrefetchScalarGridSpec(
            num_scalar_prefetch=0,
            grid=(grid,),
            in_specs=[
                pl.BlockSpec((tm, h), lambda i: (i, 0)),
                # Weight block resident across steps (constant index_map).
                # TODO(synk): pipeline_mode=pl.Buffered(1) would single-buffer it
                # (saves ~H*E_pad*2B of VMEM, mostly relevant on v7x); left at the
                # default buffering for robustness across JAX versions.
                pl.BlockSpec((h, e_pad), lambda i: (0, 0)),
            ],
            out_specs=[
                pl.BlockSpec((tm, e_pad), lambda i: (i, 0)),
                pl.BlockSpec((tm, out_w), lambda i: (i, 0)),
                pl.BlockSpec((8, aux_w), lambda i: (i, 0)),
            ],
        ),
        compiler_params=pltpu.CompilerParams(
            dimension_semantics=("parallel",),
            vmem_limit_bytes=_vmem_limit_bytes(tm, h, e_pad, out_w, aux_w,
                                               x.dtype, w.dtype),
        ),
    )(x, w)

    # Unpack (cheap slices; indices were stored exactly as small floats).
    router_logits = logits[:t, :e]
    expert_weights = packed[:t, :k]
    expert_indices = packed[:t, k:2 * k].astype(jnp.int32)

    # Aux losses from the tiny per-tile partials (no [T, E] HBM round-trip).
    prob_sum = aux[::8, :e].sum(axis=0)                 # (E,)
    cnt_sum = aux[::8, e_pad:e_pad + e].sum(axis=0)     # (E,)
    z_sum = aux[::8, 2 * e_pad].sum()                   # scalar

    tokens_per_expert = cnt_sum / t
    router_prob_per_expert = prob_sum / t
    load_balancing_loss = e * jnp.sum(tokens_per_expert * router_prob_per_expert)
    router_z_loss = z_sum / t
    aux_loss_dict = {
        "load_balancing_loss": load_balancing_loss,
        "router_z_loss": router_z_loss,
    }

    return expert_weights, expert_indices, router_logits, aux_loss_dict


if __name__ == "__main__":
    # Small config consistent with the module's forward contract.
    batch, seq, hidden = 2, 8, 32
    num_experts, num_selected = 8, 2

    key = jax.random.PRNGKey(0)
    k_x, k_w = jax.random.split(key)
    hidden_states = jax.random.normal(k_x, (batch, seq, hidden), dtype=jnp.float32)
    router_weight = jax.random.normal(k_w, (hidden, num_experts), dtype=jnp.float32)
    router_weight = router_weight * (1.0 / jnp.sqrt(jnp.float32(hidden)))

    weights, indices, logits, aux = expert_router(
        hidden_states, router_weight, num_selected_experts=num_selected
    )
    jax.block_until_ready((weights, indices, logits, aux))

    # --- correctness checks ---
    # The kernel feeds bf16 activations/weights to the MXU (f32 accumulation),
    # so the reference is computed from the same bf16-rounded values.
    x_bf = hidden_states.astype(jnp.bfloat16).astype(jnp.float32).reshape(-1, hidden)
    w_bf = router_weight.astype(jnp.bfloat16).astype(jnp.float32)
    ref_logits = jnp.dot(x_bf, w_bf, precision=jax.lax.Precision.HIGHEST)
    assert logits.shape == (batch * seq, num_experts)
    assert jnp.allclose(logits, ref_logits, atol=2e-3, rtol=2e-3)

    # Top-k selection / renormalized weights, compared on the kernel's own logits.
    probs_from_logits = jax.nn.softmax(logits, axis=-1)
    ref_vals, ref_idx = jax.lax.top_k(probs_from_logits, num_selected)
    ref_w = ref_vals / jnp.sum(ref_vals, axis=-1, keepdims=True)
    assert indices.shape == (batch * seq, num_selected)
    assert weights.shape == (batch * seq, num_selected)
    assert jnp.array_equal(indices, ref_idx)
    assert jnp.allclose(weights, ref_w, atol=2e-3)

    # Aux losses vs reference formulas.
    one_hot = jax.nn.one_hot(indices, num_experts, dtype=jnp.float32)
    ref_tpe = jnp.mean(jnp.sum(one_hot, axis=1), axis=0)
    ref_rpe = jnp.mean(probs_from_logits, axis=0)
    ref_lb = num_experts * jnp.sum(ref_tpe * ref_rpe)
    ref_z = jnp.mean(jnp.square(jax.nn.logsumexp(logits, axis=-1)))
    assert jnp.allclose(aux["load_balancing_loss"], ref_lb, rtol=1e-2, atol=1e-3)
    assert jnp.allclose(aux["router_z_loss"], ref_z, rtol=1e-2, atol=1e-3)

    print("KERNEL_OK")
</pallas_src>

<mosaic_0001>
module attributes {stable_mosaic.version = 11 : i64} {
  func.func @_router_kernel(%arg0: i32, %arg1: memref<16x32xbf16, #tpu.memory_space<vmem>>, %arg2: memref<32x128xbf16, #tpu.memory_space<vmem>>, %arg3: memref<16x128xf32, #tpu.memory_space<vmem>>, %arg4: memref<16x128xf32, #tpu.memory_space<vmem>>, %arg5: memref<8x384xf32, #tpu.memory_space<vmem>>) attributes {dimension_semantics = [#tpu.dimension_semantics<parallel>], iteration_bounds = array<i64: 1>, scalar_prefetch = 0 : i64, scratch_operands = 0 : i64, tpu.core_type = #tpu.core_type<tc>, window_params = [{transform_indices = @transform_0, window_bounds = array<i64: 16, 32>}, {pipeline_mode = #tpu.pipeline_mode<synchronous>, transform_indices = @transform_1, window_bounds = array<i64: 32, 128>}, {transform_indices = @transform_2, window_bounds = array<i64: 16, 128>}, {transform_indices = @transform_3, window_bounds = array<i64: 16, 128>}, {transform_indices = @transform_4, window_bounds = array<i64: 8, 384>}]} {
    %c0 = arith.constant 0 : index
    %c0_0 = arith.constant 0 : index
    %0 = vector.load %arg1[%c0, %c0_0] : memref<16x32xbf16, #tpu.memory_space<vmem>>, vector<16x32xbf16>
    %c0_1 = arith.constant 0 : index
    %c0_2 = arith.constant 0 : index
    %1 = vector.load %arg2[%c0_1, %c0_2] : memref<32x128xbf16, #tpu.memory_space<vmem>>, vector<32x128xbf16>
    %cst = arith.constant dense<0.000000e+00> : vector<16x128xf32>
    %2 = tpu.matmul %0, %1, %cst {dimension_numbers = #tpu.dot_dimension_numbers<[1], [0], [0], [1], [0, 0, 1, 1], [], []>} : vector<16x32xbf16>, vector<32x128xbf16>, vector<16x128xf32> -> vector<16x128xf32>
    %c0_3 = arith.constant 0 : index
    %c0_4 = arith.constant 0 : index
    %3 = vector.load %arg3[%c0_3, %c0_4] : memref<16x128xf32, #tpu.memory_space<vmem>>, vector<16x128xf32>
    tpu.vector_store %arg3[%c0_3, %c0_4], %2 {strides = array<i32>} : memref<16x128xf32, #tpu.memory_space<vmem>>, vector<16x128xf32>,
    %4 = tpu.iota {dimensions = array<i32: 1>} : vector<16x128xi32>
    %c8_i32 = arith.constant 8 : i32
    %5 = vector.broadcast %c8_i32 : i32 to vector<16x128xi32>
    %6 = arith.cmpi slt, %4, %5 : vector<16x128xi32>
    %cst_5 = arith.constant 0xFF800000 : f32
    %7 = vector.broadcast %cst_5 : f32 to vector<16x128xf32>
    %8 = arith.select %6, %2, %7 : vector<16x128xi1>, vector<16x128xf32>
    %cst_6 = arith.constant dense<0xFF800000> : vector<16xf32>
    %9 = vector.multi_reduction <maximumf>, %8, %cst_6 [1] : vector<16x128xf32> to vector<16xf32>
    %10 = vector.shape_cast %9 : vector<16xf32> to vector<16x1xf32>
    %11 = vector.broadcast %10 : vector<16x1xf32> to vector<16x128xf32>
    %12 = arith.subf %8, %11 : vector<16x128xf32>
    %13 = math.exp %12 : vector<16x128xf32>
    %cst_7 = arith.constant dense<0.000000e+00> : vector<16xf32>
    %14 = vector.multi_reduction <add>, %13, %cst_7 [1] : vector<16x128xf32> to vector<16xf32>
    %15 = vector.shape_cast %14 : vector<16xf32> to vector<16x1xf32>
    %16 = tpu.reciprocal %15 {approx = true} : vector<16x1xf32> -> vector<16x1xf32>
    %17 = vector.broadcast %16 : vector<16x1xf32> to vector<16x128xf32>
    %18 = arith.mulf %13, %17 : vector<16x128xf32>
    %c16_i32 = arith.constant 16 : i32
    %19 = arith.muli %arg0, %c16_i32 : i32
    %20 = tpu.iota {dimensions = array<i32: 0>} : vector<16x1xi32>
    %21 = vector.broadcast %19 : i32 to vector<16x1xi32>
    %22 = arith.addi %21, %20 : vector<16x1xi32>
    %c16_i32_8 = arith.constant 16 : i32
    %23 = vector.broadcast %c16_i32_8 : i32 to vector<16x1xi32>
    %24 = arith.cmpi slt, %22, %23 : vector<16x1xi32>
    %25 = arith.extui %24 : vector<16x1xi1> to vector<16x1xi32>
    %26 = arith.sitofp %25 : vector<16x1xi32> to vector<16x1xf32>
    %cst_9 = arith.constant 0xFF800000 : f32
    %27 = vector.broadcast %cst_9 : f32 to vector<16x128xf32>
    %28 = arith.select %6, %18, %27 : vector<16x128xi1>, vector<16x128xf32>
    %cst_10 = arith.constant 0.000000e+00 : f32
    %29 = vector.broadcast %cst_10 : f32 to vector<1x128xf32>
    %cst_11 = arith.constant dense<0xFF800000> : vector<16xf32>
    %30 = vector.multi_reduction <maximumf>, %28, %cst_11 [1] : vector<16x128xf32> to vector<16xf32>
    %31 = vector.shape_cast %30 : vector<16xf32> to vector<16x1xf32>
    %32 = vector.broadcast %31 : vector<16x1xf32> to vector<16x128xf32>
    %33 = arith.cmpf oeq, %28, %32 : vector<16x128xf32>
    %c128_i32 = arith.constant 128 : i32
    %34 = vector.broadcast %c128_i32 : i32 to vector<16x128xi32>
    %35 = arith.select %33, %4, %34 : vector<16x128xi1>, vector<16x128xi32>
    %cst_12 = arith.constant dense<2147483647> : vector<16xi32>
    %36 = vector.multi_reduction <minsi>, %35, %cst_12 [1] : vector<16x128xi32> to vector<16xi32>
    %37 = vector.shape_cast %36 : vector<16xi32> to vector<16x1xi32>
    %38 = vector.broadcast %37 : vector<16x1xi32> to vector<16x128xi32>
    %39 = arith.cmpi eq, %4, %38 : vector<16x128xi32>
    %cst_13 = arith.constant 0.000000e+00 : f32
    %40 = vector.shape_cast %26 : vector<16x1xf32> to vector<16x1xf32>
    %41 = vector.broadcast %40 : vector<16x1xf32> to vector<16x128xf32>
    %42 = vector.broadcast %cst_13 : f32 to vector<16x128xf32>
    %43 = arith.select %39, %41, %42 : vector<16x128xi1>, vector<16x128xf32>
    %cst_14 = arith.constant dense<0.000000e+00> : vector<128xf32>
    %44 = vector.multi_reduction <add>, %43, %cst_14 [0] : vector<16x128xf32> to vector<128xf32>
    %45 = vector.shape_cast %44 : vector<128xf32> to vector<1x128xf32>
    %46 = arith.addf %29, %45 : vector<1x128xf32>
    %47 = arith.sitofp %37 : vector<16x1xi32> to vector<16x1xf32>
    %cst_15 = arith.constant 0xFF800000 : f32
    %48 = vector.broadcast %cst_15 : f32 to vector<16x128xf32>
    %49 = arith.select %39, %48, %28 : vector<16x128xi1>, vector<16x128xf32>
    %cst_16 = arith.constant dense<0xFF800000> : vector<16xf32>
    %50 = vector.multi_reduction <maximumf>, %49, %cst_16 [1] : vector<16x128xf32> to vector<16xf32>
    %51 = vector.shape_cast %50 : vector<16xf32> to vector<16x1xf32>
    %52 = vector.broadcast %51 : vector<16x1xf32> to vector<16x128xf32>
    %53 = arith.cmpf oeq, %49, %52 : vector<16x128xf32>
    %c128_i32_17 = arith.constant 128 : i32
    %54 = vector.broadcast %c128_i32_17 : i32 to vector<16x128xi32>
    %55 = arith.select %53, %4, %54 : vector<16x128xi1>, vector<16x128xi32>
    %cst_18 = arith.constant dense<2147483647> : vector<16xi32>
    %56 = vector.multi_reduction <minsi>, %55, %cst_18 [1] : vector<16x128xi32> to vector<16xi32>
    %57 = vector.shape_cast %56 : vector<16xi32> to vector<16x1xi32>
    %58 = vector.broadcast %57 : vector<16x1xi32> to vector<16x128xi32>
    %59 = arith.cmpi eq, %4, %58 : vector<16x128xi32>
    %cst_19 = arith.constant 0.000000e+00 : f32
    %60 = vector.shape_cast %26 : vector<16x1xf32> to vector<16x1xf32>
    %61 = vector.broadcast %60 : vector<16x1xf32> to vector<16x128xf32>
    %62 = vector.broadcast %cst_19 : f32 to vector<16x128xf32>
    %63 = arith.select %59, %61, %62 : vector<16x128xi1>, vector<16x128xf32>
    %cst_20 = arith.constant dense<0.000000e+00> : vector<128xf32>
    %64 = vector.multi_reduction <add>, %63, %cst_20 [0] : vector<16x128xf32> to vector<128xf32>
    %65 = vector.shape_cast %64 : vector<128xf32> to vector<1x128xf32>
    %66 = arith.addf %46, %65 : vector<1x128xf32>
    %67 = arith.sitofp %57 : vector<16x1xi32> to vector<16x1xf32>
    %68 = arith.addf %31, %51 : vector<16x1xf32>
    %69 = tpu.iota {dimensions = array<i32: 1>} : vector<16x128xi32>
    %cst_21 = arith.constant 0.000000e+00 : f32
    %70 = vector.broadcast %cst_21 : f32 to vector<16x128xf32>
    %71 = arith.divf %31, %68 : vector<16x1xf32>
    %c0_i32 = arith.constant 0 : i32
    %72 = vector.broadcast %c0_i32 : i32 to vector<16x128xi32>
    %73 = arith.cmpi eq, %69, %72 : vector<16x128xi32>
    %74 = vector.shape_cast %71 : vector<16x1xf32> to vector<16x1xf32>
    %75 = vector.broadcast %74 : vector<16x1xf32> to vector<16x128xf32>
    %76 = arith.select %73, %75, %70 : vector<16x128xi1>, vector<16x128xf32>
    %c2_i32 = arith.constant 2 : i32
    %77 = vector.broadcast %c2_i32 : i32 to vector<16x128xi32>
    %78 = arith.cmpi eq, %69, %77 : vector<16x128xi32>
    %79 = vector.shape_cast %47 : vector<16x1xf32> to vector<16x1xf32>
    %80 = vector.broadcast %79 : vector<16x1xf32> to vector<16x128xf32>
    %81 = arith.select %78, %80, %76 : vector<16x128xi1>, vector<16x128xf32>
    %82 = arith.divf %51, %68 : vector<16x1xf32>
    %c1_i32 = arith.constant 1 : i32
    %83 = vector.broadcast %c1_i32 : i32 to vector<16x128xi32>
    %84 = arith.cmpi eq, %69, %83 : vector<16x128xi32>
    %85 = vector.shape_cast %82 : vector<16x1xf32> to vector<16x1xf32>
    %86 = vector.broadcast %85 : vector<16x1xf32> to vector<16x128xf32>
    %87 = arith.select %84, %86, %81 : vector<16x128xi1>, vector<16x128xf32>
    %c3_i32 = arith.constant 3 : i32
    %88 = vector.broadcast %c3_i32 : i32 to vector<16x128xi32>
    %89 = arith.cmpi eq, %69, %88 : vector<16x128xi32>
    %90 = vector.shape_cast %67 : vector<16x1xf32> to vector<16x1xf32>
    %91 = vector.broadcast %90 : vector<16x1xf32> to vector<16x128xf32>
    %92 = arith.select %89, %91, %87 : vector<16x128xi1>, vector<16x128xf32>
    %c0_22 = arith.constant 0 : index
    %c0_23 = arith.constant 0 : index
    %93 = vector.load %arg4[%c0_22, %c0_23] : memref<16x128xf32, #tpu.memory_space<vmem>>, vector<16x128xf32>
    tpu.vector_store %arg4[%c0_22, %c0_23], %92 {strides = array<i32>} : memref<16x128xf32, #tpu.memory_space<vmem>>, vector<16x128xf32>,
    %94 = vector.broadcast %26 : vector<16x1xf32> to vector<16x128xf32>
    %95 = arith.mulf %18, %94 : vector<16x128xf32>
    %cst_24 = arith.constant dense<0.000000e+00> : vector<128xf32>
    %96 = vector.multi_reduction <add>, %95, %cst_24 [0] : vector<16x128xf32> to vector<128xf32>
    %97 = vector.shape_cast %96 : vector<128xf32> to vector<1x128xf32>
    %98 = math.log %15 : vector<16x1xf32>
    %99 = arith.addf %10, %98 : vector<16x1xf32>
    %100 = arith.mulf %99, %99 : vector<16x1xf32>
    %101 = arith.mulf %100, %26 : vector<16x1xf32>
    %cst_25 = arith.constant dense<0.000000e+00> : vector<1xf32>
    %102 = vector.multi_reduction <add>, %101, %cst_25 [0] : vector<16x1xf32> to vector<1xf32>
    %103 = vector.shape_cast %102 : vector<1xf32> to vector<1x1xf32>
    %cst_26 = arith.constant 0.000000e+00 : f32
    %104 = vector.broadcast %cst_26 : f32 to vector<8x384xf32>
    %c0_27 = arith.constant 0 : index
    %c0_28 = arith.constant 0 : index
    %105 = vector.load %arg5[%c0_27, %c0_28] : memref<8x384xf32, #tpu.memory_space<vmem>>, vector<8x384xf32>
    tpu.vector_store %arg5[%c0_27, %c0_28], %104 {strides = array<i32>} : memref<8x384xf32, #tpu.memory_space<vmem>>, vector<8x384xf32>,
    %106 = vector.shape_cast %97 : vector<1x128xf32> to vector<1x128xf32>
    %107 = vector.broadcast %106 : vector<1x128xf32> to vector<8x128xf32>
    %c0_29 = arith.constant 0 : index
    %c0_30 = arith.constant 0 : index
    %108 = vector.load %arg5[%c0_29, %c0_30] : memref<8x384xf32, #tpu.memory_space<vmem>>, vector<8x128xf32>
    tpu.vector_store %arg5[%c0_29, %c0_30], %107 {strides = array<i32>} : memref<8x384xf32, #tpu.memory_space<vmem>>, vector<8x128xf32>,
    %109 = vector.shape_cast %66 : vector<1x128xf32> to vector<1x128xf32>
    %110 = vector.broadcast %109 : vector<1x128xf32> to vector<8x128xf32>
    %c0_31 = arith.constant 0 : index
    %c128 = arith.constant 128 : index
    %111 = vector.load %arg5[%c0_31, %c128] : memref<8x384xf32, #tpu.memory_space<vmem>>, vector<8x128xf32>
    tpu.vector_store %arg5[%c0_31, %c128], %110 {strides = array<i32>} : memref<8x384xf32, #tpu.memory_space<vmem>>, vector<8x128xf32>,
    %112 = vector.shape_cast %103 : vector<1x1xf32> to vector<1x1xf32>
    %113 = vector.broadcast %112 : vector<1x1xf32> to vector<8x1xf32>
    %c0_32 = arith.constant 0 : index
    %c256 = arith.constant 256 : index
    %114 = vector.load %arg5[%c0_32, %c256] : memref<8x384xf32, #tpu.memory_space<vmem>>, vector<8x1xf32>
    tpu.vector_store %arg5[%c0_32, %c256], %113 {strides = array<i32>} : memref<8x384xf32, #tpu.memory_space<vmem>>, vector<8x1xf32>,
    return
  }
  func.func @transform_0(%arg0: i32) -> (i32, i32) {
    %c0_i32 = arith.constant 0 : i32
    %c0_i32_0 = arith.constant 0 : i32
    return %arg0, %c0_i32 : i32, i32
  }
  func.func @transform_1(%arg0: i32) -> (i32, i32) {
    %c0_i32 = arith.constant 0 : i32
    %c0_i32_0 = arith.constant 0 : i32
    %c0_i32_1 = arith.constant 0 : i32
    return %c0_i32, %c0_i32_0 : i32, i32
  }
  func.func @transform_2(%arg0: i32) -> (i32, i32) {
    %c0_i32 = arith.constant 0 : i32
    %c0_i32_0 = arith.constant 0 : i32
    return %arg0, %c0_i32 : i32, i32
  }
  func.func @transform_3(%arg0: i32) -> (i32, i32) {
    %c0_i32 = arith.constant 0 : i32
    %c0_i32_0 = arith.constant 0 : i32
    return %arg0, %c0_i32 : i32, i32
  }
  func.func @transform_4(%arg0: i32) -> (i32, i32) {
    %c0_i32 = arith.constant 0 : i32
    %c0_i32_0 = arith.constant 0 : i32
    return %arg0, %c0_i32 : i32, i32
  }
}

</mosaic_0001>

<bundles_post_ra>
// kernel: tpu_custom_call.1
= control target key start
LH: loop header
LB: loop body
LE: loop exit
PB: predicated region body
PF: predicated region fallthrough
CT: control target
= control target key end

     0   :  { %10 = vsyncpa [#allocation3], 0  ;;  %s642_s0 = inlined_call_operand.hbm [shape: bf16[16,32], index: 0, kind: input, shape index: {}]   ;;  %s643_s1 = inlined_call_operand.hbm [shape: bf16[32,128], index: 1, kind: input, shape index: {}]   ;;  %s644_s2 = inlined_call_operand.hbm [shape: f32[16,128], index: 2, kind: output, shape index: {0}]   ;;  %s645_s3 = inlined_call_operand.hbm [shape: f32[16,128], index: 3, kind: output, shape index: {1}]   ;;  %s646_s4 = inlined_call_operand.hbm [shape: f32[8,384], index: 4, kind: output, shape index: {2}]  }
   0x1   :  { %11 = vsyncpa [#allocation6], 0 }
   0x2   :  { %12 = vsyncpa [#allocation4], 0 }
   0x3   :  { %13 = vsyncpa [#allocation9], 0  ;;  %s510_s15 = smov [#allocation2]  }
   0x4   :  { %s19_s16 = sshll.u32 %s510_s15, 4  ;;  %s20_s16 = int_to_ptr.vmem [resolvable:$true] %s19_s16 }
   0x5   :  { %s410_s17 = scalar_lea.vmem %s20_s16, 128  ;;  %p415_p1 = scmp.lt.s32.totalorder %s20_s16, %s20_s16 }
   0x6   :  { %p411_p0 = scmp.ne.s32.totalorder %s20_s16, %s410_s17  ;;  %p416_p2 = scmp.lt.s32.totalorder %s410_s17, %s410_s17 }
   0x8   :  { %p417_p3 = por %p416_p2, %p415_p1 }
   0xa   :  { %p418_p4 = pnand %p417_p3, %p411_p0 }
   0xc   :  { %421 = shalt.err (!%p418_p4)
}
   0xd   :  { %s511_s18 = smov 64   ;;  %s512_s19 = smov 4  }
   0xe   :  { %25 = dma.hbm_to_vmem [thread:$0]  %s642_s0, 128, %s20_s16, [#allocation3], %s511_s18, %s511_s18, %s512_s19  }
   0xf   :  { %s513_s22 = smov [#allocation5]  }
  0x10   :  { %s31_s23 = sshll.u32 %s513_s22, 4  ;;  %s32_s23 = int_to_ptr.vmem [resolvable:$true] %s31_s23 }
  0x11   :  { %s430_s24 = scalar_lea.vmem %s32_s23, 256  ;;  %p435_p6 = scmp.lt.s32.totalorder %s32_s23, %s32_s23 }
  0x12   :  { %p431_p5 = scmp.ne.s32.totalorder %s32_s23, %s430_s24  ;;  %p436_p7 = scmp.lt.s32.totalorder %s430_s24, %s430_s24 }
  0x14   :  { %p437_p8 = por %p436_p7, %p435_p6 }
  0x16   :  { %p438_p9 = pnand %p437_p8, %p431_p5 }
  0x18   :  { %441 = shalt.err (!%p438_p9)
}
  0x19   :  { %37 = dma.hbm_to_vmem [thread:$0]  %s643_s1, 256, %s32_s23, [#allocation6], %s511_s18, %s511_s18, %s512_s19  }
  0x1a   :  { %502 = dma.done.wait [#allocation3], 128  }
  0x1b   :  { %503 = vsyncadd [#allocation3], 4294967168 }
  0x1c   :  { %504 = dma.done.wait [#allocation6], 256  }
  0x1d   :  { %505 = vsyncadd [#allocation6], 4294967040  ;;  %v514_v0 = vmov 0.0   ;;  %vm515_vm0 = vmmov 0   ;;  %v383_v1 = vld [vmem:[#allocation5 + $0x8] sm:$0xff]   ;;  %v384_v2 = vld [vmem:[#allocation5] sm:$0xff]   ;;  %v115_v4 = vlaneseq }
  0x1e   :  { %364 = vmatprep.subr.bf16.mxu0 %v514_v0  ;;  %305 = vst [vmem:[#allocation10 + $0x10] sm:$0xff] %v514_v0  ;;  %368 = vmatprep.mubr.msk.bf16.mxu0 %vm515_vm0, %v514_v0  ;;  %v385_v3 = vld [vmem:[#allocation2] sm:$0xff]   ;;  %vm68_vm1 = vcmask 261120   ;;  %vm308_vm3 = vcmask 7168   ;;  %s516_s0 = smov [#allocation7]  }
  0x1f   :  { %365 = vmatpush3.bf16.msra.mxu0 %v383_v1  ;;  %v556_v5 = vand.u32 127, %v115_v4  ;;  %s315_s1 = sshll.u32 %s516_s0, 4  ;;  %s316_s1 = int_to_ptr.vmem [resolvable:$true] %s315_s1 }
  0x20   :  { %366 = vmatprep.subr.bf16.mxu0 %v514_v0  ;;  %s442_s27 = scalar_lea.vmem %s316_s1, 256  ;;  %p447_p11 = scmp.lt.s32.totalorder %s316_s1, %s316_s1 }
  0x21   :  { %vm117_vm2 = vcmp.lt.s32.totalorder %v556_v5, 8  ;;  %p443_p10 = scmp.ne.s32.totalorder %s316_s1, %s442_s27  ;;  %p448_p12 = scmp.lt.s32.totalorder %s442_s27, %s442_s27 }
  0x23   :  { %367 = vmatpush3.bf16.msra.mxu0 %v384_v2  ;;  %p449_p13 = por %p448_p12, %p447_p11 }
  0x25   :  { %p450_p0 = pnand %p449_p13, %p443_p10 }
  0x26   :  { %369 = vmatmul.mubr.msk.bf16.vlgmr.msra.gmra.mxu0 %vm68_vm1, %v385_v3 }
  0xe6   :  { %v106_v6 = vpop.f32.mrf.mxu0 }
  0xe7   :  { %113 = vst [vmem:[#allocation7] sm:$0xff] %v106_v6  ;;  %v118_v7 = vsel %vm117_vm2, %v106_v6, -inf }
  0xe8   :  { %120 = vmax.xlane.f32.xlu0 %v118_v7  ;;  %v370_v8 = vpop.f32.mrf.mxu0 }
  0xea   :  { %v109_v9 = vpop.f32.mrf.mxu0 }
  0xeb   :  { %114 = vst [vmem:[#allocation7 + $0x8] sm:$0xff] %v109_v9  ;;  %v119_v10 = vsel %vm117_vm2, %v109_v9, -inf }
  0xec   :  { %122 = vmax.xlane.f32.xlu0 %v119_v10  ;;  %v371_v11 = vpop.f32.mrf.mxu0 }
 0x171   :  { %v121_v12 = vpop.xlane.xlu0 %120 }
 0x172   :  { %v124_v13 = vsub.f32 %v118_v7, %v121_v12 }
 0x174   :  { %v126_v14 = vmul.f32 1.442695, %v124_v13 }
 0x175   :  { %v123_v15 = vpop.xlane.xlu0 %122 }
 0x176   :  { %386 = vpow2.f32 %v126_v14  ;;  %v125_v16 = vsub.f32 %v119_v10, %v123_v15 }
 0x178   :  { %v128_v17 = vmul.f32 1.442695, %v125_v16 }
 0x17a   :  { %388 = vpow2.f32 %v128_v17 }
 0x183   :  { %v387_v18 = vpop.eup %386 }
 0x184   :  { %130 = vadd.xlane.f32.xlu1 %v387_v18 }
 0x187   :  { %v389_v19 = vpop.eup %388 }
 0x188   :  { %132 = vadd.xlane.f32.xlu1 %v389_v19 }
 0x20d   :  { %v131_v20 = vpop.xlane.xlu1 %130 }
 0x20e   :  { %390 = vrcp.f32 %v131_v20 }
 0x20f   :  { %392 = vlog2.f32 %v131_v20 }
 0x211   :  { %v133_v21 = vpop.xlane.xlu1 %132 }
 0x212   :  { %394 = vrcp.f32 %v133_v21 }
 0x213   :  { %396 = vlog2.f32 %v133_v21 }
 0x21b   :  { %v391_v22 = vpop.eup %390 }
 0x21c   :  { %v393_v23 = vpop.eup %392  ;;  %v136_v24 = vmul.f32 %v391_v22, %v387_v18 }
 0x21d   :  { %v287_v25 = vmul.f32 0.6931472, %v393_v23 }
 0x21e   :  { %v565_v26 = vsel %vm117_vm2, %v136_v24, -inf }
 0x21f   :  { %v395_v27 = vpop.eup %394  ;;  %153 = vmax.xlane.f32.xlu0 %v565_v26  ;;  %v290_v30 = vadd.f32 %v287_v25, %v121_v12 }
 0x220   :  { %v397_v28 = vpop.eup %396  ;;  %v137_v29 = vmul.f32 %v395_v27, %v389_v19 }
 0x221   :  { %v289_v31 = vmul.f32 0.6931472, %v397_v28  ;;  %v292_v36 = vmul.f32 %v290_v30, %v290_v30 }
 0x222   :  { %v152_v32 = vsel %vm117_vm2, %v137_v29, -inf  ;;  %v279_v33 = vadd.f32 %v137_v29, %v136_v24 }
 0x223   :  { %v291_v34 = vadd.f32 %v289_v31, %v123_v15  ;;  %155 = vmax.xlane.f32.xlu1 %v152_v32 }
 0x224   :  { %v280_v35 = vrot.slane %v279_v33, 4 }
 0x225   :  { %v293_v37 = vmul.f32 %v291_v34, %v291_v34 }
 0x226   :  { %v281_v38 = vadd.f32 %v280_v35, %v279_v33 }
 0x227   :  { %v296_v39 = vadd.f32 %v293_v37, %v292_v36 }
 0x228   :  { %v282_v40 = vrot.slane %v281_v38, 2 }
 0x229   :  { %v297_v41 = vrot.slane %v296_v39, 4 }
 0x22a   :  { %v283_v42 = vadd.f32 %v282_v40, %v281_v38 }
 0x22b   :  { %v298_v43 = vadd.f32 %v297_v41, %v296_v39 }
 0x22c   :  { %v284_v44 = vrot.slane %v283_v42, 1 }
 0x22d   :  { %v299_v45 = vrot.slane %v298_v43, 2 }
 0x22e   :  { %v285_v46 = vadd.f32 %v284_v44, %v283_v42 }
 0x22f   :  { %v300_v47 = vadd.f32 %v299_v45, %v298_v43 }
 0x230   :  { %306 = vst [vmem:[#allocation10] sm:$0xff] %v285_v46 }
 0x231   :  { %v301_v48 = vrot.slane %v300_v47, 1 }
 0x233   :  { %v302_v49 = vadd.f32 %v301_v48, %v300_v47 }
 0x235   :  { %309 = vst.msk [vmem:[#allocation10 + $0x10] sm:$0xff] %vm308_vm3, %v302_v49 }
 0x2a8   :  { %v570_v50 = vpop.xlane.xlu0 %153 }
 0x2a9   :  { %vm157_vm4 = vcmp.eq.f32.partialorder %v565_v26, %v570_v50 }
 0x2aa   :  { %v159_v51 = vsel %vm157_vm4, %v556_v5, 128 }
 0x2ab   :  { %v162_v52 = vshra.s32 %v159_v51, 16  ;;  %v161_v58 = vand.u32 65535, %v159_v51 }
 0x2ac   :  { %v575_v53 = vpop.xlane.xlu1 %155 }
 0x2ad   :  { %vm158_vm5 = vcmp.eq.f32.partialorder %v152_v32, %v575_v53  ;;  %v164_v54 = vcvt.s32.f32 %v162_v52  ;;  %v163_v60 = vcvt.s32.f32 %v161_v58 }
 0x2ae   :  { %v160_v55 = vsel %vm158_vm5, %v556_v5, 128 }
 0x2af   :  { %165 = vmin.xlane.f32.xlu0 %v164_v54  ;;  %v176_v56 = vshra.s32 %v160_v55, 16  ;;  %v175_v61 = vand.u32 65535, %v160_v55 }
 0x2b1   :  { %v178_v57 = vcvt.s32.f32 %v176_v56  ;;  %v177_v1 = vcvt.s32.f32 %v175_v61 }
 0x2b3   :  { %179 = vmin.xlane.f32.xlu1 %v178_v57 }
 0x338   :  { %v166_v59 = vpop.xlane.xlu0 %165 }
 0x339   :  { %vm167_vm6 = vcmp.eq.f32.partialorder %v164_v54, %v166_v59  ;;  %v172_v3 = vcvt.f32.s32 %v166_v59 }
 0x33a   :  { %v168_v62 = vsel %vm167_vm6, %v163_v60, inf }
 0x33b   :  { %169 = vmin.xlane.f32.xlu0 %v168_v62  ;;  %v173_v6 = vshll.u32 %v172_v3, 16 }
 0x33c   :  { %v180_v63 = vpop.xlane.xlu1 %179 }
 0x33d   :  { %vm181_vm7 = vcmp.eq.f32.partialorder %v178_v57, %v180_v63  ;;  %v186_v7 = vcvt.f32.s32 %v180_v63 }
 0x33e   :  { %v182_v2 = vsel %vm181_vm7, %v177_v1, inf }
 0x33f   :  { %183 = vmin.xlane.f32.xlu1 %v182_v2  ;;  %v187_v11 = vshll.u32 %v186_v7, 16 }
 0x3c4   :  { %v170_v4 = vpop.xlane.xlu0 %169 }
 0x3c5   :  { %v171_v8 = vcvt.f32.s32 %v170_v4 }
 0x3c7   :  { %v579_v9 = vadd.s32 %v173_v6, %v171_v8 }
 0x3c8   :  { %v184_v10 = vpop.xlane.xlu1 %183 }
 0x3c9   :  { %v185_v12 = vcvt.f32.s32 %v184_v10  ;;  %vm189_vm8 = vcmp.eq.s32.totalorder %v556_v5, %v579_v9 }
 0x3ca   :  { %v203_v13 = vsel %vm189_vm8, -inf, %v565_v26  ;;  %v191_v15 = vsel %vm189_vm8, 1.0, %v514_v0 }
 0x3cb   :  { %v584_v14 = vadd.s32 %v187_v11, %v185_v12  ;;  %205 = vmax.xlane.f32.xlu0 %v203_v13 }
 0x3cd   :  { %vm190_vm9 = vcmp.eq.s32.totalorder %v556_v5, %v584_v14 }
 0x3ce   :  { %v204_v16 = vsel %vm190_vm9, -inf, %v152_v32  ;;  %v192_v17 = vsel %vm190_vm9, 1.0, %v514_v0 }
 0x3cf   :  { %207 = vmax.xlane.f32.xlu1 %v204_v16  ;;  %v590_v18 = vadd.f32 %v192_v17, %v191_v15 }
 0x454   :  { %v206_v19 = vpop.xlane.xlu0 %205 }
 0x455   :  { %vm209_vm10 = vcmp.eq.f32.partialorder %v203_v13, %v206_v19 }
 0x456   :  { %v211_v20 = vsel %vm209_vm10, %v556_v5, 128 }
 0x457   :  { %v214_v21 = vshra.s32 %v211_v20, 16  ;;  %v213_v27 = vand.u32 65535, %v211_v20 }
 0x458   :  { %v593_v22 = vpop.xlane.xlu1 %207 }
 0x459   :  { %vm210_vm11 = vcmp.eq.f32.partialorder %v204_v16, %v593_v22  ;;  %v216_v23 = vcvt.s32.f32 %v214_v21  ;;  %v215_v29 = vcvt.s32.f32 %v213_v27 }
 0x45a   :  { %v212_v24 = vsel %vm210_vm11, %v556_v5, 128 }
 0x45b   :  { %217 = vmin.xlane.f32.xlu0 %v216_v23  ;;  %v228_v25 = vshra.s32 %v212_v24, 16  ;;  %v227_v30 = vand.u32 65535, %v212_v24 }
 0x45d   :  { %v230_v26 = vcvt.s32.f32 %v228_v25  ;;  %v229_v33 = vcvt.s32.f32 %v227_v30 }
 0x45f   :  { %231 = vmin.xlane.f32.xlu1 %v230_v26 }
 0x4e4   :  { %v218_v28 = vpop.xlane.xlu0 %217 }
 0x4e5   :  { %vm219_vm12 = vcmp.eq.f32.partialorder %v216_v23, %v218_v28 }
 0x4e6   :  { %v220_v31 = vsel %vm219_vm12, %v215_v29, inf }
 0x4e7   :  { %221 = vmin.xlane.f32.xlu0 %v220_v31 }
 0x4e8   :  { %v232_v32 = vpop.xlane.xlu1 %231 }
 0x4e9   :  { %vm233_vm13 = vcmp.eq.f32.partialorder %v230_v26, %v232_v32 }
 0x4ea   :  { %v234_v34 = vsel %vm233_vm13, %v229_v33, inf }
 0x4eb   :  { %235 = vmin.xlane.f32.xlu1 %v234_v34 }
 0x4ec   :  { %453 = shalt.err (!%p450_p0)
}
 0x4ed   :  { %s517_s28 = smov 128   ;;  %s518_s29 = smov 8   ;;  %v255_v35 = vadd.f32 %v206_v19, %v570_v50  ;;  %v256_v36 = vadd.f32 %v593_v22, %v575_v53  ;;  %vm261_vm14 = vcmp.eq.s32.totalorder %v556_v5, 0  ;;  %v224_v40 = vcvt.f32.s32 %v218_v28 }
 0x4ee   :  { %321 = dma.vmem_to_hbm [thread:$0]  %s316_s1, 256, %s644_s2, [#allocation4], %s517_s28, %s517_s28, %s518_s29   ;;  %vm264_vm15 = vcmp.eq.s32.totalorder %v556_v5, 2  ;;  %v201_v44 = vcvt.s32.f32 %v579_v9  ;;  %v238_v46 = vcvt.f32.s32 %v232_v32  ;;  %v194_v48 = vrot.slane %v590_v18, 4 }
 0x4ef   :  { %398 = vrcp.f32 %v255_v35  ;;  %v225_v45 = vshll.u32 %v224_v40, 16  ;;  %vm269_vm0 = vcmp.eq.s32.totalorder %v556_v5, 1  ;;  %vm272_vm1 = vcmp.eq.s32.totalorder %v556_v5, 3  ;;  %s519_s2 = smov [#allocation8]  }
 0x4f0   :  { %400 = vrcp.f32 %v256_v36  ;;  %v239_v55 = vshll.u32 %v238_v46, 16  ;;  %v195_v58 = vadd.f32 %v194_v48, %v590_v18  ;;  %s327_s6 = sshll.u32 %s519_s2, 4  ;;  %s328_s6 = int_to_ptr.vmem [resolvable:$true] %s327_s6 }
 0x4f1   :  { %s462_s7 = scalar_lea.vmem %s328_s6, 256  ;;  %p467_p2 = scmp.lt.s32.totalorder %s328_s6, %s328_s6 }
 0x4f2   :  { %v196_v6 = vrot.slane %v195_v58, 2  ;;  %p463_p1 = scmp.ne.s32.totalorder %s328_s6, %s462_s7  ;;  %p468_p3 = scmp.lt.s32.totalorder %s462_s7, %s462_s7 }
 0x4f4   :  { %p469_p4 = por %p468_p3, %p467_p2 }
 0x4f6   :  { %p470_p5 = pnand %p469_p4, %p463_p1 }
 0x4fc   :  { %v399_v37 = vpop.eup %398 }
 0x4fd   :  { %v258_v38 = vmul.f32 %v399_v37, %v570_v50  ;;  %v401_v39 = vpop.eup %400  ;;  %v267_v51 = vmul.f32 %v399_v37, %v206_v19 }
 0x4fe   :  { %v260_v42 = vmul.f32 %v401_v39, %v575_v53  ;;  %v202_v53 = vcvt.s32.f32 %v584_v14  ;;  %v268_v63 = vmul.f32 %v401_v39, %v593_v22 }
 0x4ff   :  { %v262_v41 = vsel %vm261_vm14, %v258_v38, 0.0 }
 0x500   :  { %v265_v49 = vsel %vm264_vm15, %v201_v44, %v262_v41  ;;  %v263_v52 = vsel %vm261_vm14, %v260_v42, 0.0 }
 0x501   :  { %v270_v59 = vsel %vm269_vm0, %v267_v51, %v265_v49  ;;  %v266_v60 = vsel %vm264_vm15, %v202_v53, %v263_v52 }
 0x502   :  { %v271_v2 = vsel %vm269_vm0, %v268_v63, %v266_v60 }
 0x570   :  { %v222_v43 = vpop.xlane.xlu0 %221 }
 0x571   :  { %v223_v47 = vcvt.f32.s32 %v222_v43 }
 0x573   :  { %v226_v50 = vadd.s32 %v225_v45, %v223_v47 }
 0x574   :  { %v236_v54 = vpop.xlane.xlu1 %235 }
 0x575   :  { %v253_v56 = vcvt.s32.f32 %v226_v50  ;;  %v237_v57 = vcvt.f32.s32 %v236_v54  ;;  %vm241_vm2 = vcmp.eq.s32.totalorder %v556_v5, %v226_v50 }
 0x576   :  { %v243_v3 = vsel %vm241_vm2, 1.0, %v514_v0 }
 0x577   :  { %v273_v61 = vsel %vm272_vm1, %v253_v56, %v270_v59  ;;  %v240_v62 = vadd.s32 %v239_v55, %v237_v57 }
 0x578   :  { %275 = vst [vmem:[#allocation8] sm:$0xff] %v273_v61 }
 0x579   :  { %vm242_vm3 = vcmp.eq.s32.totalorder %v556_v5, %v240_v62  ;;  %v254_v1 = vcvt.s32.f32 %v240_v62 }
 0x57a   :  { %v244_v4 = vsel %vm242_vm3, 1.0, %v514_v0 }
 0x57b   :  { %v245_v7 = vadd.f32 %v244_v4, %v243_v3  ;;  %v274_v8 = vsel %vm272_vm1, %v254_v1, %v271_v2 }
 0x57c   :  { %276 = vst [vmem:[#allocation8 + $0x8] sm:$0xff] %v274_v8 }
 0x57d   :  { %v246_v9 = vrot.slane %v245_v7, 4 }
 0x57e   :  { %473 = shalt.err (!%p470_p5)
}
 0x57f   :  { %333 = dma.vmem_to_hbm [thread:$0]  %s328_s6, 256, %s645_s3, [#allocation9], %s517_s28, %s517_s28, %s518_s29   ;;  %v197_v0 = vadd.f32 %v196_v6, %v195_v58  ;;  %v247_v10 = vadd.f32 %v246_v9, %v245_v7 }
 0x580   :  { %s520_s10 = smov [#allocation10]  }
 0x581   :  { %v248_v5 = vrot.slane %v247_v10, 2  ;;  %v198_v11 = vrot.slane %v197_v0, 1  ;;  %s340_s11 = sshll.u32 %s520_s10, 4  ;;  %s341_s11 = int_to_ptr.vmem [resolvable:$true] %s340_s11 }
 0x582   :  { %s482_s12 = scalar_lea.vmem %s341_s11, 384  ;;  %p487_p7 = scmp.lt.s32.totalorder %s341_s11, %s341_s11 }
 0x583   :  { %v249_v12 = vadd.f32 %v248_v5, %v247_v10  ;;  %v199_v14 = vadd.f32 %v198_v11, %v197_v0  ;;  %p483_p6 = scmp.ne.s32.totalorder %s341_s11, %s482_s12  ;;  %p488_p8 = scmp.lt.s32.totalorder %s482_s12, %s482_s12 }
 0x585   :  { %v250_v13 = vrot.slane %v249_v12, 1  ;;  %p489_p9 = por %p488_p8, %p487_p7 }
 0x587   :  { %v251_v15 = vadd.f32 %v250_v13, %v249_v12  ;;  %p490_p10 = pnand %p489_p9, %p483_p6 }
 0x589   :  { %v252_v16 = vadd.f32 %v251_v15, %v199_v14 }
 0x58b   :  { %307 = vst [vmem:[#allocation10 + $0x8] sm:$0xff] %v252_v16 }
 0x58c   :  { %493 = shalt.err (!%p490_p10)
}
 0x58d   :  { %343 = dma.vmem_to_hbm [thread:$0]  %s341_s11, 384, %s646_s4, [#allocation9]  }
 0x58e   :  { %506 = dma.done.wait [#allocation4], 256  }
 0x58f   :  { %507 = vsyncadd [#allocation4], 4294967040 }
 0x590   :  { %508 = dma.done.wait [#allocation9], 640  }
 0x591   :  { %509 = vsyncadd [#allocation9], 4294966656 }
 0x592   :  { %353 = vsyncpa [#allocation3], 1 }
 0x593   :  { %354 = vsyncpa [#allocation6], 1 }
 0x594   :  { %355 = vsyncpa [#allocation4], 1 }
 0x595   :  { %356 = vsyncpa [#allocation9], 1 }

</bundles_post_ra>
